<compile_context>
chip_gen: v7x
topology: tpu7x:2x2x1
jax: 0.10.0
libtpu: 0.0.40
codegen_flags: <defaults>
</compile_context>

<pallas_src>
import functools

import jax
import jax.numpy as jnp
from jax.experimental import pallas as pl
from jax.experimental.pallas import tpu as pltpu


def _round_up(x, m):
    return ((x + m - 1) // m) * m


def qnetwork_kernel(x_ref, w1_ref, b1_ref, w2_ref, b2_ref, w3_ref, b3_ref,
                    out_ref):
    """One (TB, D) batch tile through the full 3-layer MLP on the MXU."""

    def dense(a, w_ref, b_ref):
        w = w_ref[...]
        # Cast the activation to the weight dtype (bf16 fast-path on v6e/v7x)
        # but always accumulate in f32 on the MXU; bias add stays in f32.
        return jnp.dot(a.astype(w.dtype), w,
                       preferred_element_type=jnp.float32) + b_ref[...]

    x = x_ref[...]                                   # (TB, D) f32
    h1 = jnp.maximum(dense(x, w1_ref, b1_ref), 0.0)  # (TB, 64) f32, ReLU
    h2 = jnp.maximum(dense(h1, w2_ref, b2_ref), 0.0)  # (TB, 64) f32, ReLU
    out_ref[...] = dense(h2, w3_ref, b3_ref).astype(out_ref.dtype)


@functools.partial(jax.jit, static_argnames=("batch_tile",))
def qnetwork_forward(state, params, *, batch_tile=512):
    """state: (B, H, W) float32. Returns (B, action_space_size) float32."""
    B, H, W = state.shape
    D = H * W
    x = state.reshape(B, D).astype(jnp.float32)  # torch .view(-1, H*W)

    w1, b1, w2, b2, w3, b3 = params
    hidden = w1.shape[1]
    A = w3.shape[1]

    # Batch tile: multiple of 8 (f32 sublane), capped so double-buffered
    # (TB, D)+(TB, A) tiles plus the ~20 KB of weights stay far below the
    # scoped VMEM limit on every generation (incl. v7x's 64 MiB).
    TB = max(8, min(batch_tile, _round_up(B, 8)))
    B_pad = _round_up(B, TB)
    if B_pad != B:
        x = jnp.pad(x, ((0, B_pad - B), (0, 0)))  # zero rows -> harmless math
    grid = (B_pad // TB,)

    def batch_map(i):
        return (i, 0)

    def const_map(i):
        return (0, 0)  # same block every step -> weights stay VMEM-resident

    out = pl.pallas_call(
        qnetwork_kernel,
        out_shape=jax.ShapeDtypeStruct((B_pad, A), jnp.float32),
        grid=grid,
        in_specs=[
            pl.BlockSpec((TB, D), batch_map),        # x tile (pipelined)
            pl.BlockSpec((D, hidden), const_map),    # w1
            pl.BlockSpec((1, hidden), const_map),    # b1
            pl.BlockSpec((hidden, hidden), const_map),  # w2
            pl.BlockSpec((1, hidden), const_map),    # b2
            pl.BlockSpec((hidden, A), const_map),    # w3
            pl.BlockSpec((1, A), const_map),         # b3
        ],
        out_specs=pl.BlockSpec((TB, A), batch_map),
        compiler_params=pltpu.CompilerParams(
            dimension_semantics=("parallel",)),      # megacore split on v7x
    )(x, w1, b1, w2, b2, w3, b3)

    return out[:B]


def init_params(key, state_space_size, action_space_size, hidden=64,
                weight_dtype=jnp.float32):
    """Deterministic init mimicking nn.Linear's uniform(-1/sqrt(fan_in), ...).
    Weights are stored as (in, out) (i.e. transposed vs. PyTorch) so the
    kernel computes plain x @ W + b on the MXU."""
    def linear(k, fan_in, fan_out):
        kw, kb = jax.random.split(k)
        bound = 1.0 / jnp.sqrt(jnp.float32(fan_in))
        w = jax.random.uniform(kw, (fan_in, fan_out), jnp.float32,
                               -bound, bound).astype(weight_dtype)
        b = jax.random.uniform(kb, (1, fan_out), jnp.float32, -bound, bound)
        return w, b

    k1, k2, k3 = jax.random.split(key, 3)
    w1, b1 = linear(k1, state_space_size, hidden)
    w2, b2 = linear(k2, hidden, hidden)
    w3, b3 = linear(k3, hidden, action_space_size)
    return (w1, b1, w2, b2, w3, b3)


def qnetwork_reference(state, params):
    B, H, W = state.shape
    x = state.reshape(B, H * W).astype(jnp.float32)
    w1, b1, w2, b2, w3, b3 = params
    w1, w2, w3 = (w.astype(jnp.float32) for w in (w1, w2, w3))
    h1 = jnp.maximum(x @ w1 + b1, 0.0)
    h2 = jnp.maximum(h1 @ w2 + b2, 0.0)
    return h2 @ w3 + b3


if __name__ == "__main__":
    # Small shapes consistent with the module: state = (B, H, W), D = H*W.
    H, W = 8, 8                  # state_space_size = 64
    ACTIONS = 4                  # action_space_size

    key = jax.random.PRNGKey(0)
    k_state, k_state_big, k_params = jax.random.split(key, 3)

    params_f32 = init_params(k_params, H * W, ACTIONS)

    # 1) Small batch, f32 weights: exact match with the f32 reference.
    state_small = jax.random.normal(k_state, (8, H, W), dtype=jnp.float32)
    out_small = jax.block_until_ready(qnetwork_forward(state_small, params_f32))
    ref_small = qnetwork_reference(state_small, params_f32)
    assert out_small.shape == (8, ACTIONS)
    assert jnp.allclose(out_small, ref_small, atol=1e-5, rtol=1e-5)

    # 2) Larger batch NOT divisible by the 512-row tile: exercises the batch
    #    grid, padding, and the parallel batch axis.
    state_big = jax.random.normal(k_state_big, (1000, H, W), dtype=jnp.float32)
    out_big = jax.block_until_ready(qnetwork_forward(state_big, params_f32))
    ref_big = qnetwork_reference(state_big, params_f32)
    assert out_big.shape == (1000, ACTIONS)
    assert jnp.allclose(out_big, ref_big, atol=1e-5, rtol=1e-5)

    # 3) bf16-weight fast path (v6e/v7x MXU-native), f32 accumulation:
    #    slightly looser tolerance vs. the f32 reference.
    params_bf16 = init_params(k_params, H * W, ACTIONS,
                              weight_dtype=jnp.bfloat16)
    out_bf16 = jax.block_until_ready(
        qnetwork_forward(state_big, params_bf16))
    assert out_bf16.shape == (1000, ACTIONS)
    assert jnp.allclose(out_bf16, ref_big, atol=3e-2, rtol=3e-2)

    print("KERNEL_OK")
</pallas_src>

<mosaic_0001>
module attributes {stable_mosaic.version = 11 : i64} {
  func.func @qnetwork_kernel(%arg0: i32, %arg1: memref<8x64xf32, #tpu.memory_space<vmem>>, %arg2: memref<64x64xf32, #tpu.memory_space<vmem>>, %arg3: memref<1x64xf32, #tpu.memory_space<vmem>>, %arg4: memref<64x64xf32, #tpu.memory_space<vmem>>, %arg5: memref<1x64xf32, #tpu.memory_space<vmem>>, %arg6: memref<64x4xf32, #tpu.memory_space<vmem>>, %arg7: memref<1x4xf32, #tpu.memory_space<vmem>>, %arg8: memref<8x4xf32, #tpu.memory_space<vmem>>) attributes {dimension_semantics = [#tpu.dimension_semantics<parallel>], iteration_bounds = array<i64: 1>, scalar_prefetch = 0 : i64, scratch_operands = 0 : i64, tpu.core_type = #tpu.core_type<tc>, window_params = [{transform_indices = @transform_0, window_bounds = array<i64: 8, 64>}, {pipeline_mode = #tpu.pipeline_mode<synchronous>, transform_indices = @transform_1, window_bounds = array<i64: 64, 64>}, {pipeline_mode = #tpu.pipeline_mode<synchronous>, transform_indices = @transform_2, window_bounds = array<i64: 1, 64>}, {pipeline_mode = #tpu.pipeline_mode<synchronous>, transform_indices = @transform_3, window_bounds = array<i64: 64, 64>}, {pipeline_mode = #tpu.pipeline_mode<synchronous>, transform_indices = @transform_4, window_bounds = array<i64: 1, 64>}, {pipeline_mode = #tpu.pipeline_mode<synchronous>, transform_indices = @transform_5, window_bounds = array<i64: 64, 4>}, {pipeline_mode = #tpu.pipeline_mode<synchronous>, transform_indices = @transform_6, window_bounds = array<i64: 1, 4>}, {transform_indices = @transform_7, window_bounds = array<i64: 8, 4>}]} {
    %c0 = arith.constant 0 : index
    %c0_0 = arith.constant 0 : index
    %0 = vector.load %arg1[%c0, %c0_0] : memref<8x64xf32, #tpu.memory_space<vmem>>, vector<8x64xf32>
    %c0_1 = arith.constant 0 : index
    %c0_2 = arith.constant 0 : index
    %1 = vector.load %arg2[%c0_1, %c0_2] : memref<64x64xf32, #tpu.memory_space<vmem>>, vector<64x64xf32>
    %cst = arith.constant dense<0.000000e+00> : vector<8x64xf32>
    %2 = tpu.matmul %0, %1, %cst {dimension_numbers = #tpu.dot_dimension_numbers<[1], [0], [0], [1], [0, 0, 1, 1], [], []>} : vector<8x64xf32>, vector<64x64xf32>, vector<8x64xf32> -> vector<8x64xf32>
    %c0_3 = arith.constant 0 : index
    %c0_4 = arith.constant 0 : index
    %3 = vector.load %arg3[%c0_3, %c0_4] : memref<1x64xf32, #tpu.memory_space<vmem>>, vector<1x64xf32>
    %4 = vector.broadcast %3 : vector<1x64xf32> to vector<8x64xf32>
    %5 = arith.addf %2, %4 : vector<8x64xf32>
    %cst_5 = arith.constant 0.000000e+00 : f32
    %6 = vector.broadcast %cst_5 : f32 to vector<8x64xf32>
    %7 = arith.maximumf %5, %6 : vector<8x64xf32>
    %c0_6 = arith.constant 0 : index
    %c0_7 = arith.constant 0 : index
    %8 = vector.load %arg4[%c0_6, %c0_7] : memref<64x64xf32, #tpu.memory_space<vmem>>, vector<64x64xf32>
    %cst_8 = arith.constant dense<0.000000e+00> : vector<8x64xf32>
    %9 = tpu.matmul %7, %8, %cst_8 {dimension_numbers = #tpu.dot_dimension_numbers<[1], [0], [0], [1], [0, 0, 1, 1], [], []>} : vector<8x64xf32>, vector<64x64xf32>, vector<8x64xf32> -> vector<8x64xf32>
    %c0_9 = arith.constant 0 : index
    %c0_10 = arith.constant 0 : index
    %10 = vector.load %arg5[%c0_9, %c0_10] : memref<1x64xf32, #tpu.memory_space<vmem>>, vector<1x64xf32>
    %11 = vector.broadcast %10 : vector<1x64xf32> to vector<8x64xf32>
    %12 = arith.addf %9, %11 : vector<8x64xf32>
    %cst_11 = arith.constant 0.000000e+00 : f32
    %13 = vector.broadcast %cst_11 : f32 to vector<8x64xf32>
    %14 = arith.maximumf %12, %13 : vector<8x64xf32>
    %c0_12 = arith.constant 0 : index
    %c0_13 = arith.constant 0 : index
    %15 = vector.load %arg6[%c0_12, %c0_13] : memref<64x4xf32, #tpu.memory_space<vmem>>, vector<64x4xf32>
    %cst_14 = arith.constant dense<0.000000e+00> : vector<8x4xf32>
    %16 = tpu.matmul %14, %15, %cst_14 {dimension_numbers = #tpu.dot_dimension_numbers<[1], [0], [0], [1], [0, 0, 1, 1], [], []>} : vector<8x64xf32>, vector<64x4xf32>, vector<8x4xf32> -> vector<8x4xf32>
    %c0_15 = arith.constant 0 : index
    %c0_16 = arith.constant 0 : index
    %17 = vector.load %arg7[%c0_15, %c0_16] : memref<1x4xf32, #tpu.memory_space<vmem>>, vector<1x4xf32>
    %18 = vector.broadcast %17 : vector<1x4xf32> to vector<8x4xf32>
    %19 = arith.addf %16, %18 : vector<8x4xf32>
    %c0_17 = arith.constant 0 : index
    %c0_18 = arith.constant 0 : index
    %20 = vector.load %arg8[%c0_17, %c0_18] : memref<8x4xf32, #tpu.memory_space<vmem>>, vector<8x4xf32>
    tpu.vector_store %arg8[%c0_17, %c0_18], %19 {strides = array<i32>} : memref<8x4xf32, #tpu.memory_space<vmem>>, vector<8x4xf32>,
    return
  }
  func.func @transform_0(%arg0: i32) -> (i32, i32) {
    %c0_i32 = arith.constant 0 : i32
    %c0_i32_0 = arith.constant 0 : i32
    return %arg0, %c0_i32 : i32, i32
  }
  func.func @transform_1(%arg0: i32) -> (i32, i32) {
    %c0_i32 = arith.constant 0 : i32
    %c0_i32_0 = arith.constant 0 : i32
    %c0_i32_1 = arith.constant 0 : i32
    return %c0_i32, %c0_i32_0 : i32, i32
  }
  func.func @transform_2(%arg0: i32) -> (i32, i32) {
    %c0_i32 = arith.constant 0 : i32
    %c0_i32_0 = arith.constant 0 : i32
    %c0_i32_1 = arith.constant 0 : i32
    return %c0_i32, %c0_i32_0 : i32, i32
  }
  func.func @transform_3(%arg0: i32) -> (i32, i32) {
    %c0_i32 = arith.constant 0 : i32
    %c0_i32_0 = arith.constant 0 : i32
    %c0_i32_1 = arith.constant 0 : i32
    return %c0_i32, %c0_i32_0 : i32, i32
  }
  func.func @transform_4(%arg0: i32) -> (i32, i32) {
    %c0_i32 = arith.constant 0 : i32
    %c0_i32_0 = arith.constant 0 : i32
    %c0_i32_1 = arith.constant 0 : i32
    return %c0_i32, %c0_i32_0 : i32, i32
  }
  func.func @transform_5(%arg0: i32) -> (i32, i32) {
    %c0_i32 = arith.constant 0 : i32
    %c0_i32_0 = arith.constant 0 : i32
    %c0_i32_1 = arith.constant 0 : i32
    return %c0_i32, %c0_i32_0 : i32, i32
  }
  func.func @transform_6(%arg0: i32) -> (i32, i32) {
    %c0_i32 = arith.constant 0 : i32
    %c0_i32_0 = arith.constant 0 : i32
    %c0_i32_1 = arith.constant 0 : i32
    return %c0_i32, %c0_i32_0 : i32, i32
  }
  func.func @transform_7(%arg0: i32) -> (i32, i32) {
    %c0_i32 = arith.constant 0 : i32
    %c0_i32_0 = arith.constant 0 : i32
    return %arg0, %c0_i32 : i32, i32
  }
}

</mosaic_0001>

<bundles_post_ra>
// kernel: qnetwork_forward.1
= control target key start
LH: loop header
LB: loop body
LE: loop exit
PB: predicated region body
PF: predicated region fallthrough
CT: control target
= control target key end

     0   :  { %v429_v0 = vmov 0.0|0.0   ;;  %vm430_vm0 = vmmov 0   ;;  %v431_v4 = vmov 0.0   ;;  %vm42_vm1 = vcmask 523264   ;;  %s577_s1 = inlined_call_operand.vmem [shape: f32[64,64], index: 1, kind: input, shape index: {}]   ;;  %s578_s3 = inlined_call_operand.vmem [shape: f32[64,64], index: 3, kind: input, shape index: {}]   ;;  %s579_s0 = inlined_call_operand.vmem [shape: f32[8,64], index: 0, kind: input, shape index: {}]   ;;  %s580_s5 = inlined_call_operand.vmem [shape: f32[64,4], index: 5, kind: input, shape index: {}]   ;;  %s581_s2 = inlined_call_operand.vmem [shape: f32[1,64], index: 2, kind: input, shape index: {}]   ;;  %s582_s4 = inlined_call_operand.vmem [shape: f32[1,64], index: 4, kind: input, shape index: {}]   ;;  %s583_s6 = inlined_call_operand.vmem [shape: f32[1,4], index: 6, kind: input, shape index: {}]   ;;  %s584_s7 = inlined_call_operand.vmem [shape: f32[8,4], index: 7, kind: output, shape index: {}]  }
   0x1   :  { %390 = vmatprep.subr.bf16.mxu0 %v429_v0  ;;  %v27_v1 = vld [vmem:[%s577_s1] sm:$0xff]  ;;  %v28_v2 = vld [vmem:[%s577_s1 + $0x8] sm:$0xff]  ;;  %v29_v3 = vld [vmem:[%s577_s1 + $0x10] sm:$0xff]  ;;  %349 = vmatprep.mubr.msk.f32.mxu0 %vm430_vm0, %v431_v4  ;;  %vm294_vm2 = vcmask 31744  }
   0x2   :  { %v391_v5 = vpack.c.bf16 %v28_v2, %v27_v1  ;;  %v30_v6 = vld [vmem:[%s577_s1 + $0x18] sm:$0xff]  ;;  %402 = vmatprep.subr.bf16.mxu1 %v429_v0  ;;  %368 = vmatprep.mubr.msk.f32.mxu1 %vm430_vm0, %v431_v4  ;;  %v117_v8 = vld [vmem:[%s578_s3] sm:$0xff]  ;;  %v118_v9 = vld [vmem:[%s578_s3 + $0x8] sm:$0xff] }
   0x3   :  { %v394_v7 = vpack.c.bf16 %v30_v6, %v29_v3  ;;  %v119_v10 = vld [vmem:[%s578_s3 + $0x10] sm:$0xff]  ;;  %v31_v11 = vld [vmem:[%s577_s1 + $0x20] sm:$0xff]  ;;  %v32_v12 = vld [vmem:[%s577_s1 + $0x28] sm:$0xff]  ;;  %v403_v13 = vpack.c.bf16 %v118_v9, %v117_v8 }
   0x4   :  { %392 = vmatpush3.bf16.msra.mxu0 %v391_v5  ;;  %v120_v14 = vld [vmem:[%s578_s3 + $0x18] sm:$0xff]  ;;  %v397_v16 = vpack.c.bf16 %v32_v12, %v31_v11  ;;  %v121_v17 = vld [vmem:[%s578_s3 + $0x20] sm:$0xff]  ;;  %v122_v18 = vld [vmem:[%s578_s3 + $0x28] sm:$0xff] }
   0x5   :  { %393 = vmatprep.subr.bf16.mxu0 %v429_v0  ;;  %404 = vmatpush3.bf16.msra.mxu1 %v403_v13  ;;  %v406_v15 = vpack.c.bf16 %v120_v14, %v119_v10  ;;  %v33_v19 = vld [vmem:[%s577_s1 + $0x30] sm:$0xff]  ;;  %v34_v20 = vld [vmem:[%s577_s1 + $0x38] sm:$0xff]  ;;  %v409_v21 = vpack.c.bf16 %v122_v18, %v121_v17  ;;  %v26_v23 = vld [vmem:[%s579_s0] sm:$0xff] }
   0x6   :  { %405 = vmatprep.subr.bf16.mxu1 %v429_v0  ;;  %v400_v22 = vpack.c.bf16 %v34_v20, %v33_v19  ;;  %v123_v24 = vld [vmem:[%s578_s3 + $0x30] sm:$0xff]  ;;  %v124_v25 = vld [vmem:[%s578_s3 + $0x38] sm:$0xff]  ;;  %v206_v27 = vld [vmem:[%s580_s5] sm:$0xff] }
   0x7   :  { %v412_v26 = vpack.c.bf16 %v124_v25, %v123_v24  ;;  %v207_v28 = vld [vmem:[%s580_s5 + $0x8] sm:$0xff]  ;;  %v208_v29 = vld [vmem:[%s580_s5 + $0x10] sm:$0xff]  ;;  %v209_v31 = vld [vmem:[%s580_s5 + $0x18] sm:$0xff] }
   0x8   :  { %395 = vmatpush3.bf16.msra.mxu0 %v394_v7  ;;  %v415_v30 = vpack.c.bf16 %v207_v28, %v206_v27  ;;  %v418_v32 = vpack.c.bf16 %v209_v31, %v208_v29  ;;  %v210_v33 = vld [vmem:[%s580_s5 + $0x20] sm:$0xff]  ;;  %v211_v34 = vld [vmem:[%s580_s5 + $0x28] sm:$0xff]  ;;  %v212_v41 = vld [vmem:[%s580_s5 + $0x30] sm:$0xff] }
   0x9   :  { %396 = vmatprep.subr.bf16.mxu0 %v429_v0  ;;  %407 = vmatpush3.bf16.msra.mxu1 %v406_v15  ;;  %v421_v35 = vpack.c.bf16 %v211_v34, %v210_v33  ;;  %v300_v36 = vld [vmem:[%s581_s2] ss:$0 sm:$0xff]  ;;  %v213_v42 = vld [vmem:[%s580_s5 + $0x38] sm:$0xff] }
   0xa   :  { %408 = vmatprep.subr.bf16.mxu1 %v429_v0  ;;  %v424_v43 = vpack.c.bf16 %v213_v42, %v212_v41  ;;  %v302_v44 = vld [vmem:[%s582_s4] ss:$0 sm:$0xff] }
   0xb   :  { %v304_v49 = vld [vmem:[%s583_s6] ss:$0 sm:$0xff] }
   0xc   :  { %398 = vmatpush3.bf16.msra.mxu0 %v397_v16 }
   0xd   :  { %399 = vmatprep.subr.bf16.mxu0 %v429_v0  ;;  %410 = vmatpush3.bf16.msra.mxu1 %v409_v21 }
   0xe   :  { %411 = vmatprep.subr.bf16.mxu1 %v429_v0 }
  0x10   :  { %401 = vmatpush3.bf16.msra.mxu0 %v400_v22 }
  0x11   :  { %414 = vmatprep.subr.bf16.mxu0 %v429_v0  ;;  %413 = vmatpush3.bf16.msra.mxu1 %v412_v26 }
  0x13   :  { %350 = vmatmul.mubr.msk.f32.vlgmr.msra.gmra.mrb[0].mxu0 %vm42_vm1, %v26_v23 }
  0x14   :  { %387 = vmatprep.mubr.msk.f32.mxu0 %vm430_vm0, %v431_v4  ;;  %416 = vmatpush3.bf16.msra.mxu0 %v415_v30 }
  0x15   :  { %417 = vmatprep.subr.bf16.mxu0 %v429_v0 }
  0x18   :  { %419 = vmatpush3.bf16.msra.mxu0 %v418_v32 }
  0x19   :  { %420 = vmatprep.subr.bf16.mxu0 %v429_v0 }
  0x1c   :  { %422 = vmatpush3.bf16.msra.mxu0 %v421_v35 }
  0x1d   :  { %423 = vmatprep.subr.bf16.mxu0 %v429_v0 }
  0x20   :  { %425 = vmatpush3.bf16.msra.mxu0 %v424_v43 }
  0xe6   :  { %v112_v37 = vpop.f32.mrb[0].mxu0 }
  0xe7   :  { %v113_v38 = vadd.f32 %v300_v36, %v112_v37  ;;  %v351_v39 = vpop.f32.mrb[1].mxu0 }
  0xe9   :  { %v116_v40 = vmax.f32 %v113_v38, 0.0 }
  0xeb   :  { %369 = vmatmul.mubr.msk.f32.vlgmr.msra.gmra.mrb[0].mxu1 %vm42_vm1, %v116_v40 }
 0x1be   :  { %v201_v45 = vpop.f32.mrb[0].mxu1 }
 0x1bf   :  { %v202_v46 = vadd.f32 %v302_v44, %v201_v45  ;;  %v370_v47 = vpop.f32.mrb[1].mxu1 }
 0x1c1   :  { %v205_v48 = vmax.f32 %v202_v46, 0.0 }
 0x1c3   :  { %388 = vmatmul.mubr.msk.f32.vlgmr.msra.gmra.mrb[2].mxu0 %vm42_vm1, %v205_v48 }
 0x296   :  { %v290_v50 = vpop.f32.mrb[2].mxu0 }
 0x297   :  { %v291_v51 = vadd.f32 %v304_v49, %v290_v50  ;;  %v389_v52 = vpop.f32.mrb[3].mxu0 }
 0x299   :  { %295 = vst.msk [vmem:[%s584_s7] sm:$0xff] %vm294_vm2, %v291_v51 }

</bundles_post_ra>
